<compile_context>
chip_gen: v5e
topology: v5e:2x2
jax: 0.10.0
libtpu: 0.0.40
codegen_flags: <defaults>
</compile_context>

<pallas_src>
import functools

import jax
import jax.numpy as jnp
from jax.experimental import pallas as pl
from jax.experimental.pallas import tpu as pltpu

F_OUT = 128    # packed output lane width (unmasked 128-lane stores)
IN_W = 16      # packed [x | h0] lane width (input_size + hidden = 11 <= 16)
H_OFF = 8      # h1 lives in output lanes [H_OFF, H_OFF + hidden)
TB_MAX = 2048  # max batch-tile rows per grid step (~5-6 MiB/step VMEM)


def auv_rnn_kernel(xh_ref, wcat_ref, w1_ref, w2_ref, out_ref):
    """One batch tile: fused RNN cell (f32) + 2-layer MLP (bf16 MXU, f32 acc)."""
    xh = xh_ref[...]                                             # (tb, 16) f32
    # Fused RNN cell: tanh([x|h0] @ [W_ih^T ; W_hh^T]); h1 -> lanes 8:13, exact f32.
    h1 = jnp.tanh(jnp.dot(xh, wcat_ref[...],
                          preferred_element_type=jnp.float32))   # (tb, 128) f32
    # fc1: bf16 operands, f32 accumulation on the MXU, then LeakyReLU(0.1).
    z = jnp.dot(h1.astype(jnp.bfloat16), w1_ref[...],
                preferred_element_type=jnp.float32)              # (tb, 128) f32
    z = jnp.maximum(z, jnp.float32(0.1) * z)                     # 2 VALU ops/vreg
    # fc2: bf16 operands, f32 accumulation -> dv in lanes 0:3.
    dv = jnp.dot(z.astype(jnp.bfloat16), w2_ref[...],
                 preferred_element_type=jnp.float32)             # (tb, 128) f32
    # dv occupies lanes 0:3, h1 occupies lanes 8:13 -> disjoint, pack by adding.
    out_ref[...] = dv + h1


def _tile_plan(k):
    """Pick (tb, kp): padding stays within one 8-row granule of each tile, and
    the grid has >= 2 steps whenever the batch is non-trivial (v7x megacore)."""
    kp8 = ((k + 7) // 8) * 8
    if kp8 <= 16:
        n_steps = 1
    else:
        n_steps = max(2, -(-kp8 // TB_MAX))
    tb = ((-(-kp8 // n_steps) + 7) // 8) * 8
    return tb, tb * n_steps


@functools.partial(jax.jit, static_argnames=("tb", "kp", "hidden", "out_sz"))
def _forward(s, a, h0_2d, wcat_p, w1_p, w2_p, *, tb, kp, hidden, out_sz):
    k = s.shape[0]
    # Glue (fused by XLA under jit): concat + flatten history, pack [x | h0].
    x = jnp.concatenate([s[:, :, 3:], a], axis=-1).reshape(k, -1).astype(jnp.float32)
    xh = jnp.concatenate([x, h0_2d.astype(jnp.float32)], axis=-1)       # (k, 11)
    xh_p = jnp.pad(xh, ((0, kp - k), (0, IN_W - xh.shape[1])))          # (kp, 16)

    out_p = pl.pallas_call(
        auv_rnn_kernel,
        out_shape=jax.ShapeDtypeStruct((kp, F_OUT), jnp.float32),
        grid=(kp // tb,),
        in_specs=[
            pl.BlockSpec((tb, IN_W), lambda i: (i, 0)),        # packed [x|h0]
            pl.BlockSpec((IN_W, F_OUT), lambda i: (0, 0)),     # fused W_cat (f32, resident)
            pl.BlockSpec((F_OUT, F_OUT), lambda i: (0, 0)),    # W_fc1^T (bf16, resident)
            pl.BlockSpec((F_OUT, F_OUT), lambda i: (0, 0)),    # W_fc2^T (bf16, resident)
        ],
        out_specs=pl.BlockSpec((tb, F_OUT), lambda i: (i, 0)),
        compiler_params=pltpu.CompilerParams(
            dimension_semantics=("parallel",)),
    )(xh_p, wcat_p, w1_p, w2_p)

    dv = out_p[:k, :out_sz]                                             # (k, 3)
    hN = out_p[:k, H_OFF:H_OFF + hidden][None, :, :]                    # (1, k, hidden)
    return dv, hN


class AUVRNN2DDeltaVPallas:
    def __init__(self, key, rnn_hidden_size=5, rnn_layers=1):
        assert rnn_layers == 1, "module default is a single RNN layer"
        self.hist, self.sDim, self.aDim = 1, 6, 3
        self.input_size = self.sDim - 3 + self.aDim   # 6
        self.output_size = self.sDim - 3               # 3
        self.hidden = rnn_hidden_size
        assert self.input_size + self.hidden <= IN_W
        assert self.output_size <= H_OFF
        assert H_OFF + self.hidden <= F_OUT

        # Deterministic parameter init (shapes match torch.nn.RNN / Linear, bias=False).
        k1, k2, k3, k4 = jax.random.split(key, 4)
        b_rnn = 1.0 / jnp.sqrt(jnp.float32(rnn_hidden_size))
        self.w_ih = jax.random.uniform(k1, (rnn_hidden_size, self.input_size),
                                       jnp.float32, -b_rnn, b_rnn)
        self.w_hh = jax.random.uniform(k2, (rnn_hidden_size, rnn_hidden_size),
                                       jnp.float32, -b_rnn, b_rnn)
        b_fc1 = 1.0 / jnp.sqrt(jnp.float32(rnn_hidden_size))
        self.w_fc1 = jax.random.uniform(k3, (32, rnn_hidden_size),
                                        jnp.float32, -b_fc1, b_fc1)
        b_fc2 = 1.0 / jnp.sqrt(jnp.float32(32))
        self.w_fc2 = jax.random.uniform(k4, (self.output_size, 32),
                                        jnp.float32, -b_fc2, b_fc2)

        # Pre-transpose / pre-pad weights ONCE (static; resident in VMEM).
        h, i_sz, o_sz = self.hidden, self.input_size, self.output_size
        wcat = jnp.zeros((IN_W, F_OUT), jnp.float32)
        wcat = wcat.at[0:i_sz, H_OFF:H_OFF + h].set(self.w_ih.T)          # (6, 5)
        wcat = wcat.at[i_sz:i_sz + h, H_OFF:H_OFF + h].set(self.w_hh.T)   # (5, 5)
        self.wcat_p = wcat                                                # (16, 128) f32
        self.w1_p = jnp.zeros((F_OUT, F_OUT), jnp.bfloat16).at[
            H_OFF:H_OFF + h, 0:32].set(self.w_fc1.T.astype(jnp.bfloat16))  # (128,128) bf16
        self.w2_p = jnp.zeros((F_OUT, F_OUT), jnp.bfloat16).at[
            0:32, 0:o_sz].set(self.w_fc2.T.astype(jnp.bfloat16))           # (128,128) bf16

    def __call__(self, s, a, h0=None):
        k = s.shape[0]
        if s.shape[1] != self.hist:
            raise ValueError(
                f"the number of previous steps {s.shape[1]} != expected {self.hist}")
        if h0 is None:
            h0_2d = jnp.zeros((k, self.hidden), jnp.float32)
        else:
            h0_2d = h0[0]                                               # (k, hidden)
        tb, kp = _tile_plan(k)
        return _forward(s, a, h0_2d, self.wcat_p, self.w1_p, self.w2_p,
                        tb=tb, kp=kp, hidden=self.hidden, out_sz=self.output_size)


def _reference_f32(model, s, a, h0_2d):
    """Pure-f32 JAX reference of the original forward pass."""
    k = s.shape[0]
    x = jnp.concatenate([s[:, :, 3:], a], axis=-1).reshape(k, -1)
    h1 = jnp.tanh(x @ model.w_ih.T + h0_2d @ model.w_hh.T)
    z = h1 @ model.w_fc1.T
    z = jnp.where(z >= 0, z, 0.1 * z)
    dv = z @ model.w_fc2.T
    return dv, h1


def _reference_matched(model, s, a, h0_2d):
    """Same math, but with fc1/fc2 operands rounded to bf16 (matches the kernel's
    bf16-operand / f32-accumulation MXU path)."""
    k = s.shape[0]
    x = jnp.concatenate([s[:, :, 3:], a], axis=-1).reshape(k, -1)
    h1 = jnp.tanh(x @ model.w_ih.T + h0_2d @ model.w_hh.T)
    bf = lambda t: t.astype(jnp.bfloat16).astype(jnp.float32)
    z = bf(h1) @ bf(model.w_fc1.T)
    z = jnp.maximum(z, 0.1 * z)
    dv = bf(z) @ bf(model.w_fc2.T)
    return dv, h1


if __name__ == "__main__":
    key = jax.random.PRNGKey(0)
    ks, ka, kh, kw = jax.random.split(key, 4)

    model = AUVRNN2DDeltaVPallas(kw, rnn_hidden_size=5, rnn_layers=1)

    # --- small batch, default h0 = 0 (single grid step, tb = 8) ---
    k = 2
    s = jax.random.normal(ks, (k, 1, 6), jnp.float32)   # (batch, hist=1, sDim=6)
    a = jax.random.normal(ka, (k, 1, 3), jnp.float32)   # (batch, hist=1, aDim=3)
    dv, hN = model(s, a)
    jax.block_until_ready((dv, hN))

    h0z = jnp.zeros((k, 5), jnp.float32)
    dv_f, h1_f = _reference_f32(model, s, a, h0z)
    dv_m, _ = _reference_matched(model, s, a, h0z)
    assert dv.shape == (k, 3) and hN.shape == (1, k, 5)
    assert jnp.allclose(hN[0], h1_f, atol=1e-5), "hN mismatch vs f32 reference"
    assert jnp.allclose(dv, dv_m, atol=5e-3), "dv mismatch vs bf16-matched reference"
    assert jnp.allclose(dv, dv_f, atol=3e-2), "dv mismatch vs f32 reference"

    # --- larger batch with nonzero h0 (2 grid steps: tb=304, kp=608, pad=8) ---
    k2 = 600
    s2 = jax.random.normal(jax.random.fold_in(ks, 1), (k2, 1, 6), jnp.float32)
    a2 = jax.random.normal(jax.random.fold_in(ka, 1), (k2, 1, 3), jnp.float32)
    h0 = jax.random.normal(kh, (1, k2, 5), jnp.float32)
    dv2, hN2 = model(s2, a2, h0)
    jax.block_until_ready((dv2, hN2))

    dv2_f, h1_2_f = _reference_f32(model, s2, a2, h0[0])
    dv2_m, _ = _reference_matched(model, s2, a2, h0[0])
    assert dv2.shape == (k2, 3) and hN2.shape == (1, k2, 5)
    assert jnp.allclose(hN2[0], h1_2_f, atol=1e-4), "hN mismatch (grid path)"
    assert jnp.allclose(dv2, dv2_m, atol=5e-3), "dv mismatch vs matched ref (grid path)"
    assert jnp.allclose(dv2, dv2_f, atol=3e-2), "dv mismatch vs f32 ref (grid path)"

    print("KERNEL_OK")
</pallas_src>

<mosaic_0001>
module attributes {stable_mosaic.version = 11 : i64} {
  func.func @auv_rnn_kernel(%arg0: i32, %arg1: memref<8x16xf32, #tpu.memory_space<vmem>>, %arg2: memref<16x128xf32, #tpu.memory_space<vmem>>, %arg3: memref<128x128xbf16, #tpu.memory_space<vmem>>, %arg4: memref<128x128xbf16, #tpu.memory_space<vmem>>, %arg5: memref<8x128xf32, #tpu.memory_space<vmem>>) attributes {dimension_semantics = [#tpu.dimension_semantics<parallel>], iteration_bounds = array<i64: 1>, scalar_prefetch = 0 : i64, scratch_operands = 0 : i64, tpu.core_type = #tpu.core_type<tc>, window_params = [{transform_indices = @transform_0, window_bounds = array<i64: 8, 16>}, {pipeline_mode = #tpu.pipeline_mode<synchronous>, transform_indices = @transform_1, window_bounds = array<i64: 16, 128>}, {pipeline_mode = #tpu.pipeline_mode<synchronous>, transform_indices = @transform_2, window_bounds = array<i64: 128, 128>}, {pipeline_mode = #tpu.pipeline_mode<synchronous>, transform_indices = @transform_3, window_bounds = array<i64: 128, 128>}, {transform_indices = @transform_4, window_bounds = array<i64: 8, 128>}]} {
    %c0 = arith.constant 0 : index
    %c0_0 = arith.constant 0 : index
    %0 = vector.load %arg1[%c0, %c0_0] : memref<8x16xf32, #tpu.memory_space<vmem>>, vector<8x16xf32>
    %c0_1 = arith.constant 0 : index
    %c0_2 = arith.constant 0 : index
    %1 = vector.load %arg2[%c0_1, %c0_2] : memref<16x128xf32, #tpu.memory_space<vmem>>, vector<16x128xf32>
    %cst = arith.constant dense<0.000000e+00> : vector<8x128xf32>
    %2 = tpu.matmul %0, %1, %cst {dimension_numbers = #tpu.dot_dimension_numbers<[1], [0], [0], [1], [0, 0, 1, 1], [], []>} : vector<8x16xf32>, vector<16x128xf32>, vector<8x128xf32> -> vector<8x128xf32>
    %3 = math.tanh %2 : vector<8x128xf32>
    %4 = arith.truncf %3 : vector<8x128xf32> to vector<8x128xbf16>
    %c0_3 = arith.constant 0 : index
    %c0_4 = arith.constant 0 : index
    %5 = vector.load %arg3[%c0_3, %c0_4] : memref<128x128xbf16, #tpu.memory_space<vmem>>, vector<128x128xbf16>
    %cst_5 = arith.constant dense<0.000000e+00> : vector<8x128xf32>
    %6 = tpu.matmul %4, %5, %cst_5 {dimension_numbers = #tpu.dot_dimension_numbers<[1], [0], [0], [1], [0, 0, 1, 1], [], []>} : vector<8x128xbf16>, vector<128x128xbf16>, vector<8x128xf32> -> vector<8x128xf32>
    %cst_6 = arith.constant 1.000000e-01 : f32
    %7 = vector.broadcast %cst_6 : f32 to vector<8x128xf32>
    %8 = arith.mulf %7, %6 : vector<8x128xf32>
    %9 = arith.maximumf %6, %8 : vector<8x128xf32>
    %10 = arith.truncf %9 : vector<8x128xf32> to vector<8x128xbf16>
    %c0_7 = arith.constant 0 : index
    %c0_8 = arith.constant 0 : index
    %11 = vector.load %arg4[%c0_7, %c0_8] : memref<128x128xbf16, #tpu.memory_space<vmem>>, vector<128x128xbf16>
    %cst_9 = arith.constant dense<0.000000e+00> : vector<8x128xf32>
    %12 = tpu.matmul %10, %11, %cst_9 {dimension_numbers = #tpu.dot_dimension_numbers<[1], [0], [0], [1], [0, 0, 1, 1], [], []>} : vector<8x128xbf16>, vector<128x128xbf16>, vector<8x128xf32> -> vector<8x128xf32>
    %13 = arith.addf %12, %3 : vector<8x128xf32>
    %c0_10 = arith.constant 0 : index
    %c0_11 = arith.constant 0 : index
    %14 = vector.load %arg5[%c0_10, %c0_11] : memref<8x128xf32, #tpu.memory_space<vmem>>, vector<8x128xf32>
    tpu.vector_store %arg5[%c0_10, %c0_11], %13 {strides = array<i32>} : memref<8x128xf32, #tpu.memory_space<vmem>>, vector<8x128xf32>,
    return
  }
  func.func @transform_0(%arg0: i32) -> (i32, i32) {
    %c0_i32 = arith.constant 0 : i32
    %c0_i32_0 = arith.constant 0 : i32
    return %arg0, %c0_i32 : i32, i32
  }
  func.func @transform_1(%arg0: i32) -> (i32, i32) {
    %c0_i32 = arith.constant 0 : i32
    %c0_i32_0 = arith.constant 0 : i32
    %c0_i32_1 = arith.constant 0 : i32
    return %c0_i32, %c0_i32_0 : i32, i32
  }
  func.func @transform_2(%arg0: i32) -> (i32, i32) {
    %c0_i32 = arith.constant 0 : i32
    %c0_i32_0 = arith.constant 0 : i32
    %c0_i32_1 = arith.constant 0 : i32
    return %c0_i32, %c0_i32_0 : i32, i32
  }
  func.func @transform_3(%arg0: i32) -> (i32, i32) {
    %c0_i32 = arith.constant 0 : i32
    %c0_i32_0 = arith.constant 0 : i32
    %c0_i32_1 = arith.constant 0 : i32
    return %c0_i32, %c0_i32_0 : i32, i32
  }
  func.func @transform_4(%arg0: i32) -> (i32, i32) {
    %c0_i32 = arith.constant 0 : i32
    %c0_i32_0 = arith.constant 0 : i32
    return %arg0, %c0_i32 : i32, i32
  }
}

</mosaic_0001>

<bundles_post_ra>
// kernel: _forward.1
= control target key start
LH: loop header
LB: loop body
LE: loop exit
PB: predicated region body
PF: predicated region fallthrough
CT: control target
= control target key end

     0   :  { %9 = vsyncpa [#allocation3], 0  ;;  %s428_s0 = inlined_call_operand.vmem [shape: f32[8,16], index: 0, kind: input, shape index: {}]   ;;  %s429_s1 = inlined_call_operand.vmem [shape: f32[16,128], index: 1, kind: input, shape index: {}]   ;;  %s430_s2 = inlined_call_operand.hbm [shape: bf16[128,128], index: 2, kind: input, shape index: {}]   ;;  %s431_s3 = inlined_call_operand.hbm [shape: bf16[128,128], index: 3, kind: input, shape index: {}]   ;;  %s432_s4 = inlined_call_operand.vmem [shape: f32[8,128], index: 4, kind: output, shape index: {}]  }
   0x1   :  { %s19_s17 = sshll.u32 %s430_s2, 4  ;;  %s20_s17 = int_to_ptr.hbm [resolvable:$true] %s19_s17 }
   0x2   :  { %10 = vsyncpa [#allocation5], 0  ;;  %s381_s18 = smov [#allocation2]   ;;  %s32_s22 = sshll.u32 %s431_s3, 4  ;;  %s33_s22 = int_to_ptr.hbm [resolvable:$true] %s32_s22 }
   0x3   :  { %s21_s19 = sshll.u32 %s381_s18, 4  ;;  %s382_s23 = smov 64   ;;  %s22_s19 = int_to_ptr.vmem [resolvable:$true] %s21_s19 }
   0x4   :  { %s383_s24 = smov 4   ;;  %s384_s25 = smov [#allocation4]  }
   0x5   :  { %27 = dma.hbm_to_vmem [thread:$0]  %s20_s17, 1024, %s22_s19, [#allocation3], %s382_s23, %s382_s23, %s383_s24  }
   0x6   :  { %s34_s26 = sshll.u32 %s384_s25, 4  ;;  %s35_s26 = int_to_ptr.vmem [resolvable:$true] %s34_s26 }
   0x7   :  { %40 = dma.hbm_to_vmem [thread:$0]  %s33_s22, 1024, %s35_s26, [#allocation5], %s382_s23, %s382_s23, %s383_s24  }
   0x8   :  { %377 = dma.done.wait [#allocation3], 1024  }
   0x9   :  { %378 = vsyncadd [#allocation3], 4294966272 }
   0xa   :  { %379 = dma.done.wait [#allocation5], 1024  }
   0xb   :  { %380 = vsyncadd [#allocation5], 4294966272  ;;  %v51_v0 = vld [vmem:[%s429_s1 + $0x8] sm:$0xff]  ;;  %v50_v1 = vld [vmem:[%s429_s1] sm:$0xff]  ;;  %vm52_vm0 = vcmask 130048  }
   0xc   :  { %70 = vmatpush.msra.mxu0 %v51_v0  ;;  %v49_v2 = vld [vmem:[%s428_s0] sm:$0xff]  ;;  %v314_v3 = vld [vmem:[#allocation2 + $0x38] sm:$0xff]  ;;  %v313_v4 = vld [vmem:[#allocation2 + $0x30] sm:$0xff] }
   0xd   :  { %142 = vmatpush.bf16.msra.mxu1 %v314_v3  ;;  %v312_v5 = vld [vmem:[#allocation2 + $0x28] sm:$0xff]  ;;  %v311_v6 = vld [vmem:[#allocation2 + $0x20] sm:$0xff]  ;;  %v310_v7 = vld [vmem:[#allocation2 + $0x18] sm:$0xff] }
   0xe   :  { %71 = vmatpush.msra.mxu0 %v50_v1  ;;  %v309_v8 = vld [vmem:[#allocation2 + $0x10] sm:$0xff]  ;;  %v308_v9 = vld [vmem:[#allocation2 + $0x8] sm:$0xff]  ;;  %v307_v10 = vld [vmem:[#allocation2] sm:$0xff] }
   0xf   :  { %242 = vmatmul.msk.f32.vlgmr.msra.gmra.mxu0 %vm52_vm0, %v49_v2  ;;  %v322_v11 = vld [vmem:[#allocation4 + $0x38] sm:$0xff]  ;;  %v321_v12 = vld [vmem:[#allocation4 + $0x30] sm:$0xff]  ;;  %v320_v13 = vld [vmem:[#allocation4 + $0x28] sm:$0xff] }
  0x10   :  { %222 = vmatpush.bf16.msra.mxu2 %v322_v11  ;;  %v319_v14 = vld [vmem:[#allocation4 + $0x20] sm:$0xff]  ;;  %v318_v15 = vld [vmem:[#allocation4 + $0x18] sm:$0xff]  ;;  %v317_v16 = vld [vmem:[#allocation4 + $0x10] sm:$0xff] }
  0x11   :  { %143 = vmatpush.bf16.msra.mxu1 %v313_v4  ;;  %v316_v20 = vld [vmem:[#allocation4 + $0x8] sm:$0xff]  ;;  %v315_v21 = vld [vmem:[#allocation4] sm:$0xff] }
  0x14   :  { %223 = vmatpush.bf16.msra.mxu2 %v321_v12 }
  0x15   :  { %144 = vmatpush.bf16.msra.mxu1 %v312_v5 }
  0x18   :  { %224 = vmatpush.bf16.msra.mxu2 %v320_v13 }
  0x19   :  { %145 = vmatpush.bf16.msra.mxu1 %v311_v6 }
  0x1c   :  { %225 = vmatpush.bf16.msra.mxu2 %v319_v14 }
  0x1d   :  { %146 = vmatpush.bf16.msra.mxu1 %v310_v7 }
  0x20   :  { %226 = vmatpush.bf16.msra.mxu2 %v318_v15 }
  0x21   :  { %147 = vmatpush.bf16.msra.mxu1 %v309_v8 }
  0x24   :  { %227 = vmatpush.bf16.msra.mxu2 %v317_v16 }
  0x25   :  { %148 = vmatpush.bf16.msra.mxu1 %v308_v9 }
  0x28   :  { %228 = vmatpush.bf16.msra.mxu2 %v316_v20 }
  0x29   :  { %149 = vmatpush.bf16.msra.mxu1 %v307_v10 }
  0x2c   :  { %229 = vmatpush.bf16.msra.mxu2 %v315_v21 }
  0x8c   :  { %v73_v17 = vpop.f32.mrf.mxu0 }
  0x8d   :  { %327 = vtanh.f32 %v73_v17 }
  0x93   :  { %v328_v18 = vpop.eup %327 }
  0x94   :  { %v77_v19 = vpack.c.bf16 %v328_v18, %v328_v18 }
  0x96   :  { %150 = vmatmul.bf16.vlgmr.msra.gmra.mxu1 %v77_v19 }
 0x113   :  { %v151_v22 = vpop.f32.mrf.mxu1 }
 0x114   :  { %v155_v23 = vmul.f32 0.1, %v151_v22 }
 0x116   :  { %v156_v24 = vmax.f32 %v151_v22, %v155_v23 }
 0x118   :  { %v157_v25 = vpack.c.bf16 %v156_v24, %v156_v24 }
 0x11a   :  { %230 = vmatmul.bf16.vlgmr.msra.gmra.mxu2 %v157_v25 }
 0x11b   :  { %v153_v26 = vpop.f32.mrf.mxu1 }
 0x19d   :  { %v231_v27 = vpop.f32.mrf.mxu2 }
 0x19e   :  { %v232_v28 = vadd.f32 %v328_v18, %v231_v27 }
 0x1a0   :  { %235 = vst [vmem:[%s432_s4] sm:$0xff] %v232_v28 }
 0x1a5   :  { %v233_v29 = vpop.f32.mrf.mxu2 }
 0x1a6   :  { %240 = vsyncpa [#allocation3], 1 }
 0x1a7   :  { %241 = vsyncpa [#allocation5], 1 }

</bundles_post_ra>
